<compile_context>
chip_gen: v5e
topology: v5e:2x2
jax: 0.10.0
libtpu: 0.0.40
codegen_flags: <defaults>
</compile_context>

<pallas_src>
import functools
import math

import jax
import jax.numpy as jnp
from jax.experimental import pallas as pl
from jax.experimental.pallas import tpu as pltpu


def _se_kernel(x_ref, noise_ref,
               wn_ref, bn_ref,      # noise_proj: (noise_dim, C), (1, C)
               w1_ref, b1_ref,      # fc1:        (C, H),        (1, H)
               w2_ref, b2_ref,      # fc2:        (H, C),        (1, C)
               o_ref, *, inv_l, fold, c):
    """One program = one block of BB batch rows, laid out (BB, L/fold, fold*C)."""
    x = x_ref[...]                                   # (BB, Lf, fold*C), native dtype

    # squeeze: mean over the sequence dim, f32 accumulation (no x upcast copy)
    ysum = jnp.sum(x, axis=1, dtype=jnp.float32)     # (BB, fold*C)
    y = ysum[:, :c]
    for i in range(1, fold):                         # add the folded groups
        y = y + ysum[:, i * c:(i + 1) * c]
    y = y * inv_l                                    # (BB, C)

    # y += noise_proj(noise_embedding)   -- (BB, nd) @ (nd, C)
    n = jnp.squeeze(noise_ref[...], axis=1).astype(jnp.float32)   # (BB, nd)
    y = y + jnp.dot(n, wn_ref[...], preferred_element_type=jnp.float32) + bn_ref[...]

    # excite: fc1 -> relu -> fc2 -> sigmoid
    h = jnp.dot(y, w1_ref[...], preferred_element_type=jnp.float32) + b1_ref[...]
    h = jnp.maximum(h, 0.0)                          # (BB, H)
    s = jax.nn.sigmoid(
        jnp.dot(h, w2_ref[...], preferred_element_type=jnp.float32) + b2_ref[...])

    # scale in the native dtype; gate repeated over the folded positions
    s = s.astype(o_ref.dtype)                        # (BB, C)
    if fold > 1:
        s = jnp.concatenate([s] * fold, axis=-1)     # (BB, fold*C)
    o_ref[...] = x * s[:, None, :]


def _tpu_vmem_capacity_bytes():
    """Per-core VMEM capacity; 64 MiB => v7x-class, 128 MiB => v5e/v6e."""
    try:
        info = pltpu.get_tpu_info()
        for name in ("vmem_capacity_bytes", "vmem_bytes", "vmem_size_bytes"):
            v = getattr(info, name, None)
            if v:
                return int(v)
    except Exception:
        pass
    return 128 * 1024 * 1024


def _fold_factor(L, C):
    """Fold k sequence positions into lanes so the trailing dim is 128-dense."""
    if C % 128 == 0:
        return 1
    k = 128 // math.gcd(C, 128)
    if k <= L and L % k == 0:
        return k
    return 1  # TODO(synk): pad L (or C) for awkward shapes instead of falling back


def _pick_batch_block(B, row_bytes, target_bytes, min_grid_steps):
    """Largest BB whose x-block stays under the byte target, with >= min_grid_steps."""
    bb = max(1, min(B, target_bytes // max(row_bytes, 1)))
    if min_grid_steps > 1:
        bb = min(bb, max(1, pl.cdiv(B, min_grid_steps)))
    return bb


def squeeze_excite_block(x, noise_embedding, params):
    """x: (B, L, C), noise_embedding: (B, noise_dim). Returns (B, L, C)."""
    B, L, C = x.shape
    noise_dim = noise_embedding.shape[1]
    H = params["w1"].shape[1]

    # --- per-generation sizing ------------------------------------------------
    vmem_cap = _tpu_vmem_capacity_bytes()
    is_v7x_like = vmem_cap < 100 * 1024 * 1024        # 64 MiB VMEM => v7x, 2 TCs
    target_bytes = (8 if is_v7x_like else 4) * 1024 * 1024
    min_grid_steps = 2 if is_v7x_like else 1          # keep both v7x TCs busy

    # --- lane-dense layout ------------------------------------------------------
    fold = _fold_factor(L, C)
    Lf, Cf = L // fold, fold * C
    x_f = x.reshape(B, Lf, Cf)                        # contiguous reshape (free)
    noise_3d = noise_embedding.reshape(B, 1, noise_dim)

    itemsize = jnp.dtype(x.dtype).itemsize
    row_bytes = Lf * Cf * itemsize
    BB = _pick_batch_block(B, row_bytes, target_bytes, min_grid_steps)
    grid = (pl.cdiv(B, BB),)

    # --- VMEM accounting --------------------------------------------------------
    w_itemsize = jnp.dtype(params["w1"].dtype).itemsize
    n_itemsize = jnp.dtype(noise_embedding.dtype).itemsize
    weight_bytes = w_itemsize * (noise_dim * C + C * H + H * C + 2 * C + H)
    block_bytes = BB * row_bytes
    noise_block_bytes = BB * noise_dim * n_itemsize
    gate_tmp_bytes = BB * (Cf + 4 * C + H) * 4 + BB * Cf * itemsize
    scale_tmp_bytes = block_bytes                     # product before writeback
    vmem_need = (2 * 2 * block_bytes                  # double-buffered x in + out
                 + 2 * noise_block_bytes              # double-buffered noise
                 + 2 * weight_bytes                   # double-buffered weights/biases
                 + gate_tmp_bytes + scale_tmp_bytes
                 + (1 << 20))                         # slack for padding / spills
    vmem_limit = int(min(max(32 * 1024 * 1024, vmem_need),
                         max(32 * 1024 * 1024, vmem_cap - 16 * 1024 * 1024)))

    in_specs = [
        pl.BlockSpec((BB, Lf, Cf), lambda b: (b, 0, 0)),          # x (lane-dense)
        pl.BlockSpec((BB, 1, noise_dim), lambda b: (b, 0, 0)),    # noise
        pl.BlockSpec((noise_dim, C), lambda b: (0, 0)),           # wn
        pl.BlockSpec((1, C), lambda b: (0, 0)),                   # bn
        pl.BlockSpec((C, H), lambda b: (0, 0)),                   # w1
        pl.BlockSpec((1, H), lambda b: (0, 0)),                   # b1
        pl.BlockSpec((H, C), lambda b: (0, 0)),                   # w2
        pl.BlockSpec((1, C), lambda b: (0, 0)),                   # b2
    ]
    out_specs = pl.BlockSpec((BB, Lf, Cf), lambda b: (b, 0, 0))

    cost = pl.CostEstimate(
        flops=2 * B * (noise_dim * C + C * H + H * C) + 3 * B * L * C,
        transcendentals=B * C,
        bytes_accessed=2 * B * L * C * itemsize
        + B * noise_dim * n_itemsize + weight_bytes,
    )

    kernel = functools.partial(_se_kernel, inv_l=1.0 / L, fold=fold, c=C)

    out = pl.pallas_call(
        kernel,
        out_shape=jax.ShapeDtypeStruct((B, Lf, Cf), x.dtype),
        grid=grid,
        in_specs=in_specs,
        out_specs=out_specs,
        compiler_params=pltpu.CompilerParams(
            dimension_semantics=("parallel",),
            vmem_limit_bytes=vmem_limit),
        cost_estimate=cost,
        # NOTE: add input_output_aliases={0: 0} at the call site if x is dead
        # after this op (saves a B*L*C HBM allocation; perf-neutral).
    )(x_f, noise_3d,
      params["wn"], params["bn"],
      params["w1"], params["b1"],
      params["w2"], params["b2"])

    return out.reshape(B, L, C)


def _init_params(key, dim, reduction, noise_dim, dtype=jnp.float32):
    """Deterministic init. Weights stored already transposed to (in, out)."""
    hidden = dim // reduction
    ks = jax.random.split(key, 6)

    # torch Linear default: U(-1/sqrt(in_features), 1/sqrt(in_features))
    def lin(kw, kb, fan_in, fan_out):
        bound = 1.0 / jnp.sqrt(fan_in)
        w = jax.random.uniform(kw, (fan_in, fan_out), dtype, -bound, bound)
        b = jax.random.uniform(kb, (1, fan_out), dtype, -bound, bound)
        return w, b

    w1, b1 = lin(ks[0], ks[1], dim, hidden)          # fc1
    w2, b2 = lin(ks[2], ks[3], hidden, dim)          # fc2
    wn, bn = lin(ks[4], ks[5], noise_dim, dim)       # noise_proj
    return {"w1": w1, "b1": b1, "w2": w2, "b2": b2, "wn": wn, "bn": bn}


def _reference(x, noise, p):
    """Pure-JAX reference of the PyTorch forward."""
    y = x.mean(axis=1)                                   # (B, C)
    y = y + (noise @ p["wn"] + p["bn"])                  # (B, C)
    y = jax.nn.relu(y @ p["w1"] + p["b1"])               # (B, H)
    y = jax.nn.sigmoid(y @ p["w2"] + p["b2"])            # (B, C)
    return x * y[:, None, :]


if __name__ == "__main__":
    B, L, C = 2, 8, 64
    reduction, noise_dim = 16, 128

    key = jax.random.PRNGKey(0)
    kx, kn, kp = jax.random.split(key, 3)
    x = jax.random.normal(kx, (B, L, C), jnp.float32)
    noise = jax.random.normal(kn, (B, noise_dim), jnp.float32)
    params = _init_params(kp, C, reduction, noise_dim)

    out = squeeze_excite_block(x, noise, params)
    out = jax.block_until_ready(out)

    ref = _reference(x, noise, params)
    assert out.shape == (B, L, C)
    assert jnp.allclose(out, ref, atol=1e-5, rtol=1e-5), "mismatch vs reference"

    print("KERNEL_OK")
</pallas_src>

<mosaic_0001>
module attributes {stable_mosaic.version = 11 : i64} {
  func.func @_se_kernel(%arg0: i32, %arg1: memref<2x4x128xf32, #tpu.memory_space<vmem>>, %arg2: memref<2x1x128xf32, #tpu.memory_space<vmem>>, %arg3: memref<128x64xf32, #tpu.memory_space<vmem>>, %arg4: memref<1x64xf32, #tpu.memory_space<vmem>>, %arg5: memref<64x4xf32, #tpu.memory_space<vmem>>, %arg6: memref<1x4xf32, #tpu.memory_space<vmem>>, %arg7: memref<4x64xf32, #tpu.memory_space<vmem>>, %arg8: memref<1x64xf32, #tpu.memory_space<vmem>>, %arg9: memref<2x4x128xf32, #tpu.memory_space<vmem>>) attributes {dimension_semantics = [#tpu.dimension_semantics<parallel>], iteration_bounds = array<i64: 1>, scalar_prefetch = 0 : i64, scratch_operands = 0 : i64, tpu.core_type = #tpu.core_type<tc>, window_params = [{transform_indices = @transform_0, window_bounds = array<i64: 2, 4, 128>}, {transform_indices = @transform_1, window_bounds = array<i64: 2, 1, 128>}, {pipeline_mode = #tpu.pipeline_mode<synchronous>, transform_indices = @transform_2, window_bounds = array<i64: 128, 64>}, {pipeline_mode = #tpu.pipeline_mode<synchronous>, transform_indices = @transform_3, window_bounds = array<i64: 1, 64>}, {pipeline_mode = #tpu.pipeline_mode<synchronous>, transform_indices = @transform_4, window_bounds = array<i64: 64, 4>}, {pipeline_mode = #tpu.pipeline_mode<synchronous>, transform_indices = @transform_5, window_bounds = array<i64: 1, 4>}, {pipeline_mode = #tpu.pipeline_mode<synchronous>, transform_indices = @transform_6, window_bounds = array<i64: 4, 64>}, {pipeline_mode = #tpu.pipeline_mode<synchronous>, transform_indices = @transform_7, window_bounds = array<i64: 1, 64>}, {transform_indices = @transform_8, window_bounds = array<i64: 2, 4, 128>}]} {
    %c0 = arith.constant 0 : index
    %c0_0 = arith.constant 0 : index
    %c0_1 = arith.constant 0 : index
    %0 = vector.load %arg1[%c0, %c0_0, %c0_1] : memref<2x4x128xf32, #tpu.memory_space<vmem>>, vector<2x4x128xf32>
    %cst = arith.constant dense<0.000000e+00> : vector<2x128xf32>
    %1 = vector.multi_reduction <add>, %0, %cst [1] : vector<2x4x128xf32> to vector<2x128xf32>
    %2 = vector.extract_strided_slice %1 {offsets = [0, 0], sizes = [2, 64], strides = [1, 1]} : vector<2x128xf32> to vector<2x64xf32>
    %3 = vector.extract_strided_slice %1 {offsets = [0, 64], sizes = [2, 64], strides = [1, 1]} : vector<2x128xf32> to vector<2x64xf32>
    %4 = arith.addf %2, %3 : vector<2x64xf32>
    %cst_2 = arith.constant 1.250000e-01 : f32
    %5 = vector.broadcast %cst_2 : f32 to vector<2x64xf32>
    %6 = arith.mulf %4, %5 : vector<2x64xf32>
    %c0_3 = arith.constant 0 : index
    %c0_4 = arith.constant 0 : index
    %c0_5 = arith.constant 0 : index
    %7 = vector.load %arg2[%c0_3, %c0_4, %c0_5] : memref<2x1x128xf32, #tpu.memory_space<vmem>>, vector<2x1x128xf32>
    %8 = vector.shape_cast %7 : vector<2x1x128xf32> to vector<2x128xf32>
    %c0_6 = arith.constant 0 : index
    %c0_7 = arith.constant 0 : index
    %9 = vector.load %arg3[%c0_6, %c0_7] : memref<128x64xf32, #tpu.memory_space<vmem>>, vector<128x64xf32>
    %cst_8 = arith.constant dense<0.000000e+00> : vector<2x64xf32>
    %10 = tpu.matmul %8, %9, %cst_8 {dimension_numbers = #tpu.dot_dimension_numbers<[1], [0], [0], [1], [0, 0, 1, 1], [], []>} : vector<2x128xf32>, vector<128x64xf32>, vector<2x64xf32> -> vector<2x64xf32>
    %11 = arith.addf %6, %10 : vector<2x64xf32>
    %c0_9 = arith.constant 0 : index
    %c0_10 = arith.constant 0 : index
    %12 = vector.load %arg4[%c0_9, %c0_10] : memref<1x64xf32, #tpu.memory_space<vmem>>, vector<1x64xf32>
    %13 = vector.broadcast %12 : vector<1x64xf32> to vector<2x64xf32>
    %14 = arith.addf %11, %13 : vector<2x64xf32>
    %c0_11 = arith.constant 0 : index
    %c0_12 = arith.constant 0 : index
    %15 = vector.load %arg5[%c0_11, %c0_12] : memref<64x4xf32, #tpu.memory_space<vmem>>, vector<64x4xf32>
    %cst_13 = arith.constant dense<0.000000e+00> : vector<2x4xf32>
    %16 = tpu.matmul %14, %15, %cst_13 {dimension_numbers = #tpu.dot_dimension_numbers<[1], [0], [0], [1], [0, 0, 1, 1], [], []>} : vector<2x64xf32>, vector<64x4xf32>, vector<2x4xf32> -> vector<2x4xf32>
    %c0_14 = arith.constant 0 : index
    %c0_15 = arith.constant 0 : index
    %17 = vector.load %arg6[%c0_14, %c0_15] : memref<1x4xf32, #tpu.memory_space<vmem>>, vector<1x4xf32>
    %18 = vector.broadcast %17 : vector<1x4xf32> to vector<2x4xf32>
    %19 = arith.addf %16, %18 : vector<2x4xf32>
    %cst_16 = arith.constant 0.000000e+00 : f32
    %20 = vector.broadcast %cst_16 : f32 to vector<2x4xf32>
    %21 = arith.maximumf %19, %20 : vector<2x4xf32>
    %c0_17 = arith.constant 0 : index
    %c0_18 = arith.constant 0 : index
    %22 = vector.load %arg7[%c0_17, %c0_18] : memref<4x64xf32, #tpu.memory_space<vmem>>, vector<4x64xf32>
    %cst_19 = arith.constant dense<0.000000e+00> : vector<2x64xf32>
    %23 = tpu.matmul %21, %22, %cst_19 {dimension_numbers = #tpu.dot_dimension_numbers<[1], [0], [0], [1], [0, 0, 1, 1], [], []>} : vector<2x4xf32>, vector<4x64xf32>, vector<2x64xf32> -> vector<2x64xf32>
    %c0_20 = arith.constant 0 : index
    %c0_21 = arith.constant 0 : index
    %24 = vector.load %arg8[%c0_20, %c0_21] : memref<1x64xf32, #tpu.memory_space<vmem>>, vector<1x64xf32>
    %25 = vector.broadcast %24 : vector<1x64xf32> to vector<2x64xf32>
    %26 = arith.addf %23, %25 : vector<2x64xf32>
    %27 = arith.negf %26 : vector<2x64xf32>
    %28 = math.exp %27 : vector<2x64xf32>
    %cst_22 = arith.constant 1.000000e+00 : f32
    %29 = vector.broadcast %cst_22 : f32 to vector<2x64xf32>
    %30 = arith.addf %29, %28 : vector<2x64xf32>
    %31 = arith.divf %29, %30 : vector<2x64xf32>
    %32 = tpu.concatenate %31, %31 in 1 : vector<2x64xf32>, vector<2x64xf32> -> vector<2x128xf32>
    %33 = vector.shape_cast %32 : vector<2x128xf32> to vector<2x1x128xf32>
    %34 = vector.broadcast %33 : vector<2x1x128xf32> to vector<2x4x128xf32>
    %35 = arith.mulf %0, %34 : vector<2x4x128xf32>
    %c0_23 = arith.constant 0 : index
    %c0_24 = arith.constant 0 : index
    %c0_25 = arith.constant 0 : index
    %36 = vector.load %arg9[%c0_23, %c0_24, %c0_25] : memref<2x4x128xf32, #tpu.memory_space<vmem>>, vector<2x4x128xf32>
    tpu.vector_store %arg9[%c0_23, %c0_24, %c0_25], %35 {strides = array<i32>} : memref<2x4x128xf32, #tpu.memory_space<vmem>>, vector<2x4x128xf32>,
    return
  }
  func.func @transform_0(%arg0: i32) -> (i32, i32, i32) {
    %c0_i32 = arith.constant 0 : i32
    %c0_i32_0 = arith.constant 0 : i32
    %c0_i32_1 = arith.constant 0 : i32
    return %arg0, %c0_i32, %c0_i32_0 : i32, i32, i32
  }
  func.func @transform_1(%arg0: i32) -> (i32, i32, i32) {
    %c0_i32 = arith.constant 0 : i32
    %c0_i32_0 = arith.constant 0 : i32
    %c0_i32_1 = arith.constant 0 : i32
    return %arg0, %c0_i32, %c0_i32_0 : i32, i32, i32
  }
  func.func @transform_2(%arg0: i32) -> (i32, i32) {
    %c0_i32 = arith.constant 0 : i32
    %c0_i32_0 = arith.constant 0 : i32
    %c0_i32_1 = arith.constant 0 : i32
    return %c0_i32, %c0_i32_0 : i32, i32
  }
  func.func @transform_3(%arg0: i32) -> (i32, i32) {
    %c0_i32 = arith.constant 0 : i32
    %c0_i32_0 = arith.constant 0 : i32
    %c0_i32_1 = arith.constant 0 : i32
    return %c0_i32, %c0_i32_0 : i32, i32
  }
  func.func @transform_4(%arg0: i32) -> (i32, i32) {
    %c0_i32 = arith.constant 0 : i32
    %c0_i32_0 = arith.constant 0 : i32
    %c0_i32_1 = arith.constant 0 : i32
    return %c0_i32, %c0_i32_0 : i32, i32
  }
  func.func @transform_5(%arg0: i32) -> (i32, i32) {
    %c0_i32 = arith.constant 0 : i32
    %c0_i32_0 = arith.constant 0 : i32
    %c0_i32_1 = arith.constant 0 : i32
    return %c0_i32, %c0_i32_0 : i32, i32
  }
  func.func @transform_6(%arg0: i32) -> (i32, i32) {
    %c0_i32 = arith.constant 0 : i32
    %c0_i32_0 = arith.constant 0 : i32
    %c0_i32_1 = arith.constant 0 : i32
    return %c0_i32, %c0_i32_0 : i32, i32
  }
  func.func @transform_7(%arg0: i32) -> (i32, i32) {
    %c0_i32 = arith.constant 0 : i32
    %c0_i32_0 = arith.constant 0 : i32
    %c0_i32_1 = arith.constant 0 : i32
    return %c0_i32, %c0_i32_0 : i32, i32
  }
  func.func @transform_8(%arg0: i32) -> (i32, i32, i32) {
    %c0_i32 = arith.constant 0 : i32
    %c0_i32_0 = arith.constant 0 : i32
    %c0_i32_1 = arith.constant 0 : i32
    return %arg0, %c0_i32, %c0_i32_0 : i32, i32, i32
  }
}

</mosaic_0001>

<bundles_post_ra>
// kernel: tpu_custom_call.1
= control target key start
LH: loop header
LB: loop body
LE: loop exit
PB: predicated region body
PF: predicated region fallthrough
CT: control target
= control target key end

     0   :  { %vm32_vm0 = vcmask 1043456   ;;  %s446_s0 = inlined_call_operand.vmem [shape: f32[2,4,128], index: 0, kind: input, shape index: {}]   ;;  %s447_s1 = inlined_call_operand.vmem [shape: f32[2,1,128], index: 1, kind: input, shape index: {}]   ;;  %s448_s2 = inlined_call_operand.vmem [shape: f32[128,64], index: 2, kind: input, shape index: {}]   ;;  %s449_s3 = inlined_call_operand.vmem [shape: f32[1,64], index: 3, kind: input, shape index: {}]   ;;  %s450_s4 = inlined_call_operand.vmem [shape: f32[64,4], index: 4, kind: input, shape index: {}]   ;;  %s451_s5 = inlined_call_operand.vmem [shape: f32[1,4], index: 5, kind: input, shape index: {}]   ;;  %s452_s6 = inlined_call_operand.vmem [shape: f32[4,64], index: 6, kind: input, shape index: {}]   ;;  %s453_s7 = inlined_call_operand.vmem [shape: f32[1,64], index: 7, kind: input, shape index: {}]   ;;  %s454_s8 = inlined_call_operand.hbm [shape: f32[2,4,128], index: 8, kind: output, shape index: {}]  }
   0x1   :  { %v76_v0 = vld [vmem:[%s448_s2 + $0x78] sm:$0xff]  ;;  %v75_v1 = vld [vmem:[%s448_s2 + $0x70] sm:$0xff]  ;;  %v74_v2 = vld [vmem:[%s448_s2 + $0x68] sm:$0xff] }
   0x2   :  { %84 = vmatpush.msra.mxu0 %v76_v0  ;;  %v73_v3 = vld [vmem:[%s448_s2 + $0x60] sm:$0xff]  ;;  %v72_v6 = vld [vmem:[%s448_s2 + $0x58] sm:$0xff]  ;;  %v71_v11 = vld [vmem:[%s448_s2 + $0x50] sm:$0xff] }
   0x3   :  { %v344_v4 = vld [vmem:[%s446_s0 + $0x4] sm:$0xf]  ;;  %v59_v5 = vld [vmem:[%s447_s1] sm:$0x1]  ;;  %v60_v8 = vld [vmem:[%s447_s1 + $0x1] sm:$0x1] }
   0x4   :  { %85 = vmatpush.msra.mxu0 %v75_v1  ;;  %v40_v7 = vsel %vm32_vm0, %v344_v4, 0.0  ;;  %79 = vst [vmem:[#allocation1] ss:$9 sm:$0xff] %v59_v5  ;;  %v360_v10 = vld [vmem:[%s446_s0] sm:$0xf] }
   0x5   :  { %v41_v9 = vrot.slane %v40_v7, 4  ;;  %81 = vst [vmem:[#allocation1 + $0x1] ss:$9 sm:$0xff] %v60_v8  ;;  %v33_v12 = vsel %vm32_vm0, %v360_v10, 0.0 }
   0x6   :  { %86 = vmatpush.msra.mxu0 %v74_v2  ;;  %v34_v14 = vrot.slane %v33_v12, 4 }
   0x7   :  { %v42_v13 = vadd.f32 %v41_v9, %v40_v7 }
   0x8   :  { %87 = vmatpush.msra.mxu0 %v73_v3 }
   0xa   :  { %88 = vmatpush.msra.mxu0 %v72_v6 }
   0xb   :  { %13 = vsyncpa [#allocation3], 0  ;;  %v70_v15 = vld [vmem:[%s448_s2 + $0x48] sm:$0xff]  ;;  %v43_v16 = vrot.slane %v42_v13, 2  ;;  %v35_v17 = vadd.f32 %v34_v14, %v33_v12  ;;  %v69_v18 = vld [vmem:[%s448_s2 + $0x40] sm:$0xff]  ;;  %s281_s11 = smov 64  }
   0xc   :  { %89 = vmatpush.msra.mxu0 %v71_v11  ;;  %v68_v21 = vld [vmem:[%s448_s2 + $0x38] sm:$0xff]  ;;  %v67_v24 = vld [vmem:[%s448_s2 + $0x30] sm:$0xff]  ;;  %v66_v26 = vld [vmem:[%s448_s2 + $0x28] sm:$0xff]  ;;  %vm131_vm1 = vcmask 1041409   ;;  %vm133_vm2 = vcmask 523264   ;;  %vm162_vm3 = vcmask 31744  }
   0xd   :  { %v44_v19 = vadd.f32 %v43_v16, %v42_v13  ;;  %v36_v20 = vrot.slane %v35_v17, 2  ;;  %v65_v28 = vld [vmem:[%s448_s2 + $0x20] sm:$0xff]  ;;  %v64_v29 = vld [vmem:[%s448_s2 + $0x18] sm:$0xff]  ;;  %v63_v31 = vld [vmem:[%s448_s2 + $0x10] sm:$0xff]  ;;  %s229_s21 = sshll.u32 %s454_s8, 4  ;;  %s283_s22 = smov 4   ;;  %s230_s21 = int_to_ptr.hbm [resolvable:$true] %s229_s21 }
   0xe   :  { %90 = vmatpush.msra.mxu0 %v70_v15  ;;  %v62_v32 = vld [vmem:[%s448_s2 + $0x8] sm:$0xff]  ;;  %v61_v33 = vld [vmem:[%s448_s2] sm:$0xff]  ;;  %v123_v35 = vld [vmem:[%s450_s4 + $0x38] sm:$0xff] }
   0xf   :  { %v45_v22 = vrot.slane %v44_v19, 1  ;;  %v37_v23 = vadd.f32 %v36_v20, %v35_v17  ;;  %v82_v34 = vld [vmem:[#allocation1] sm:$0xff]  ;;  %144 = vmatpush.msra.mxu1 %v123_v35  ;;  %v122_v36 = vld [vmem:[%s450_s4 + $0x30] sm:$0xff]  ;;  %v121_v37 = vld [vmem:[%s450_s4 + $0x28] sm:$0xff] }
  0x10   :  { %91 = vmatpush.msra.mxu0 %v69_v18  ;;  %v120_v38 = vld [vmem:[%s450_s4 + $0x20] sm:$0xff]  ;;  %v119_v39 = vld [vmem:[%s450_s4 + $0x18] sm:$0xff]  ;;  %v118_v40 = vld [vmem:[%s450_s4 + $0x10] sm:$0xff] }
  0x11   :  { %v46_v25 = vadd.f32 %v45_v22, %v44_v19  ;;  %v38_v27 = vrot.slane %v37_v23, 1  ;;  %145 = vmatpush.msra.mxu1 %v122_v36  ;;  %v117_v41 = vld [vmem:[%s450_s4 + $0x8] sm:$0xff]  ;;  %v116_v42 = vld [vmem:[%s450_s4] sm:$0xff] }
  0x12   :  { %92 = vmatpush.msra.mxu0 %v68_v21  ;;  %v248_v53 = vld [vmem:[%s449_s3] ss:$0 sm:$0xff] }
  0x13   :  { %51 = vrot.lane.b32.xlu0 %v46_v25, %s281_s11  ;;  %v39_v30 = vadd.f32 %v38_v27, %v37_v23  ;;  %146 = vmatpush.msra.mxu1 %v121_v37  ;;  %v157_v58 = vld [vmem:[%s452_s6] sm:$0xf] }
  0x14   :  { %93 = vmatpush.msra.mxu0 %v67_v24  ;;  %242 = vmatpush.msk.msra.mxu2 %vm32_vm0, %v157_v58  ;;  %v249_v59 = vld [vmem:[%s451_s5] ss:$0 sm:$0xff]  ;;  %s282_s5 = smov [#allocation2]  }
  0x15   :  { %147 = vmatpush.msra.mxu1 %v120_v38  ;;  %v250_v63 = vld [vmem:[%s453_s7] ss:$0 sm:$0xff]  ;;  %s227_s6 = sshll.u32 %s282_s5, 4  ;;  %s228_s6 = int_to_ptr.vmem [resolvable:$true] %s227_s6 }
  0x16   :  { %94 = vmatpush.msra.mxu0 %v66_v26 }
  0x17   :  { %148 = vmatpush.msra.mxu1 %v119_v39 }
  0x18   :  { %95 = vmatpush.msra.mxu0 %v65_v28 }
  0x19   :  { %149 = vmatpush.msra.mxu1 %v118_v40 }
  0x1a   :  { %96 = vmatpush.msra.mxu0 %v64_v29 }
  0x1b   :  { %49 = vrot.lane.b32.xlu0 %v39_v30, %s281_s11  ;;  %150 = vmatpush.msra.mxu1 %v117_v41 }
  0x1c   :  { %97 = vmatpush.msra.mxu0 %v63_v31 }
  0x1d   :  { %151 = vmatpush.msra.mxu1 %v116_v42 }
  0x1e   :  { %98 = vmatpush.msra.mxu0 %v62_v32 }
  0x20   :  { %99 = vmatpush.msra.mxu0 %v61_v33 }
  0x21   :  { %100 = vmatmul.f32.vlgmr.msra.gmra.mxu0 %v82_v34 }
  0x85   :  { %v52_v43 = vpop.permute.xlu0 %51 }
  0x86   :  { %v56_v46 = vadd.f32 %v52_v43, %v46_v25 }
  0x88   :  { %v58_v49 = vmul.f32 0.125, %v56_v46 }
  0x8d   :  { %v50_v44 = vpop.permute.xlu0 %49 }
  0x8e   :  { %v55_v45 = vadd.f32 %v50_v44, %v39_v30 }
  0x90   :  { %v57_v47 = vmul.f32 0.125, %v55_v45 }
  0x9e   :  { %v101_v48 = vpop.f32.mrf.mxu0 }
  0x9f   :  { %v105_v50 = vrot.slane %v101_v48, 1  ;;  %v108_v51 = vadd.f32 %v101_v48, %v57_v47 }
  0xa1   :  { %v109_v52 = vadd.f32 %v105_v50, %v58_v49  ;;  %v114_v55 = vadd.f32 %v248_v53, %v108_v51 }
  0xa3   :  { %v115_v54 = vadd.f32 %v248_v53, %v109_v52 }
  0xa5   :  { %v130_v56 = vrot.slane %v115_v54, 7 }
  0xa7   :  { %v132_v57 = vsel %vm131_vm1, %v130_v56, %v114_v55 }
  0xa8   :  { %241 = vmatmul.msk.f32.vlgmr.msra.gmra.mxu1 %vm133_vm2, %v132_v57 }
 0x125   :  { %v153_v60 = vpop.f32.mrf.mxu1 }
 0x126   :  { %v154_v61 = vadd.f32 %v249_v59, %v153_v60 }
 0x128   :  { %v156_v62 = vmax.f32 %v154_v61, 0.0 }
 0x12a   :  { %243 = vmatmul.msk.f32.vlgmr.msra.gmra.mxu2 %vm162_vm3, %v156_v62 }
 0x1ad   :  { %v186_v0 = vpop.f32.mrf.mxu2 }
 0x1ae   :  { %v187_v1 = vadd.f32 %v250_v63, %v186_v0 }
 0x1b0   :  { %v244_v2 = vmul.f32 -1.442695, %v187_v1 }
 0x1b2   :  { %251 = vpow2.f32 %v244_v2 }
 0x1b8   :  { %v252_v3 = vpop.eup %251 }
 0x1b9   :  { %v192_v5 = vadd.f32 1.0, %v252_v3 }
 0x1bb   :  { %253 = vrcp.f32 %v192_v5  ;;  %v204_v9 = vand.u32 2147483648, %v192_v5  ;;  %v202_v12 = vand.u32 2147483647, %v192_v5  ;;  %vm198_vm5 = vweird.f32 %v192_v5 }
 0x1bd   :  { %v205_v14 = vor.u32 1.1754944e-38, %v204_v9  ;;  %vm203_vm7 = vcmp.eq.f32.partialorder %v202_v12, 8.507059e+37 }
 0x1c1   :  { %v254_v6 = vpop.eup %253 }
 0x1c2   :  { %v194_v7 = vmul.f32 %v254_v6, %v192_v5  ;;  %vm199_vm4 = vweird.f32 %v254_v6 }
 0x1c3   :  { %vm200_vm6 = vmor %vm198_vm5, %vm199_vm4 }
 0x1c4   :  { %v195_v8 = vsub.f32 1.0, %v194_v7 }
 0x1c6   :  { %v196_v11 = vmul.f32 %v254_v6, %v195_v8 }
 0x1c8   :  { %v197_v13 = vadd.f32 %v254_v6, %v196_v11 }
 0x1ca   :  { %v201_v15 = vsel %vm200_vm6, %v254_v6, %v197_v13 }
 0x1cb   :  { %v206_v16 = vsel %vm203_vm7, %v205_v14, %v201_v15 }
 0x1cc   :  { %209 = vrot.lane.b32.xlu1 %v206_v16, %s281_s11 }
 0x23e   :  { %v210_v17 = vpop.permute.xlu1 %209 }
 0x23f   :  { %v212_v18 = vsel %vm133_vm2, %v206_v16, %v210_v17 }
 0x240   :  { %v214_v19 = vrot.slane %v212_v18, 1  ;;  %v215_v20 = vperm.slane %v212_v18, 0 }
 0x242   :  { %v216_v21 = vperm.slane %v214_v19, 0  ;;  %v219_v22 = vmul.f32 %v215_v20, %v360_v10 }
 0x244   :  { %v220_v23 = vmul.f32 %v216_v21, %v344_v4  ;;  %221 = vst [vmem:[#allocation2] sm:$0xf] %v219_v22 }
 0x246   :  { %222 = vst [vmem:[#allocation2 + $0x4] sm:$0xf] %v220_v23 }
 0x247   :  { %235 = dma.vmem_to_hbm [thread:$0]  %s228_s6, 128, %s230_s21, [#allocation3], %s281_s11, %s281_s11, %s283_s22  }
 0x248   :  { %279 = dma.done.wait [#allocation3], 128  }
 0x249   :  { %280 = vsyncadd [#allocation3], 4294967168 }
 0x24a   :  { %240 = vsyncpa [#allocation3], 1 }

</bundles_post_ra>
